<compile_context>
chip_gen: v7x
topology: tpu7x:2x2x1
jax: 0.10.0
libtpu: 0.0.40
codegen_flags: <defaults>
</compile_context>

<pallas_src>
import functools
import math

import jax
import jax.numpy as jnp
from jax.experimental import pallas as pl
from jax.experimental.pallas import tpu as pltpu

# --------------------------------------------------------------------------
# helpers
# --------------------------------------------------------------------------

def _round_up(x, m):
    return (x + m - 1) // m * m


def _pick_tile(dim_padded, candidates):
    for c in candidates:
        if dim_padded % c == 0:
            return c
    return candidates[-1]


def _prefer_wide_tiles():
    # v6e/v7x: 2x256 MXU -> prefer 256-wide N tiles.  v5e: 4x128 MXU -> 128.
    try:
        kind = jax.devices()[0].device_kind.lower()
        return not ("v5 lite" in kind or "v5e" in kind or "v5litepod" in kind)
    except Exception:
        return True


# --------------------------------------------------------------------------
# Pallas kernel 1: tiled matmul + bias + (optional) ReLU on the MXU
# --------------------------------------------------------------------------

def _mm_kernel_f32_inplace(a_ref, b_ref, bias_ref, o_ref, *, act):
    # f32 output: accumulate straight into the resident output block.
    @pl.when(pl.program_id(2) == 0)
    def _():
        o_ref[...] = jnp.zeros_like(o_ref)

    o_ref[...] += jnp.dot(a_ref[...], b_ref[...],
                          preferred_element_type=jnp.float32)

    @pl.when(pl.program_id(2) == pl.num_programs(2) - 1)
    def _():
        out = o_ref[...] + bias_ref[...]
        if act == "relu":
            out = jnp.maximum(out, 0.0)
        o_ref[...] = out


def _mm_kernel_acc(a_ref, b_ref, bias_ref, o_ref, acc_ref, *, act):
    # non-f32 output: f32 VMEM accumulator, cast only in the epilogue.
    @pl.when(pl.program_id(2) == 0)
    def _():
        acc_ref[...] = jnp.zeros_like(acc_ref)

    acc_ref[...] += jnp.dot(a_ref[...], b_ref[...],
                            preferred_element_type=jnp.float32)

    @pl.when(pl.program_id(2) == pl.num_programs(2) - 1)
    def _():
        out = acc_ref[...] + bias_ref[...]
        if act == "relu":
            out = jnp.maximum(out, 0.0)
        o_ref[...] = out.astype(o_ref.dtype)


def pallas_matmul_bias(a, w_p, bias_p, n_logical, act="none",
                       out_dtype=jnp.float32):
    """a: (M, K) any float; w_p: (Kp, Np) bf16 PRE-PADDED; bias_p: (1, Np) f32.

    Returns (M, n_logical) in out_dtype.  bf16 MXU inputs, f32 accumulation,
    tiled over (M, N, K) with K innermost; the output block is resident over K.
    """
    M, K = a.shape
    Kp, Np = w_p.shape
    assert K <= Kp and n_logical <= Np

    Mp0 = _round_up(M, 16)            # bf16 packs 16 sublanes per vreg
    tm = min(256, Mp0)
    Mp = _round_up(Mp0, tm)
    tk = Kp if Kp <= 512 else _pick_tile(Kp, (512, 256, 128))
    tn = _pick_tile(Np, (256, 128) if _prefer_wide_tiles() else (128,))

    a_bf = a.astype(jnp.bfloat16)
    if (Mp, Kp) != (M, K):
        a_p = jnp.zeros((Mp, Kp), jnp.bfloat16).at[:M, :K].set(a_bf)
    else:
        a_p = a_bf

    grid = (Mp // tm, Np // tn, Kp // tk)
    out_bytes = jnp.dtype(out_dtype).itemsize
    cost = pl.CostEstimate(
        flops=2 * Mp * Np * Kp,
        transcendentals=0,
        bytes_accessed=Mp * Kp * 2 + Kp * Np * 2 + Mp * Np * out_bytes + Np * 4,
    )

    use_acc = out_dtype != jnp.float32
    kernel = functools.partial(_mm_kernel_acc if use_acc
                               else _mm_kernel_f32_inplace, act=act)
    scratch = [pltpu.VMEM((tm, tn), jnp.float32)] if use_acc else []

    out = pl.pallas_call(
        kernel,
        out_shape=jax.ShapeDtypeStruct((Mp, Np), out_dtype),
        grid=grid,
        in_specs=[
            pl.BlockSpec((tm, tk), lambda i, j, k: (i, k)),
            pl.BlockSpec((tk, tn), lambda i, j, k: (k, j)),
            pl.BlockSpec((1, tn), lambda i, j, k: (0, j)),
        ],
        out_specs=pl.BlockSpec((tm, tn), lambda i, j, k: (i, j)),
        scratch_shapes=scratch,
        compiler_params=pltpu.CompilerParams(
            dimension_semantics=("parallel", "parallel", "arbitrary"),
            vmem_limit_bytes=32 * 1024 * 1024),
        cost_estimate=cost,
    )(a_p, w_p, bias_p)

    if (Mp, Np) != (M, n_logical):
        out = out[:M, :n_logical]
    return out


# --------------------------------------------------------------------------
# Pallas kernel 2: fused RPN tower  (3x3 conv + ReLU -> 1x1 cls/bbox head)
# Both GEMMs share M = B*Hf*Wf; weights are tiny and stay VMEM-resident.
# --------------------------------------------------------------------------

def _rpn_fused_kernel(a_ref, w1_ref, b1_ref, w2_ref, b2_ref, o_ref):
    t = jnp.dot(a_ref[...], w1_ref[...],
                preferred_element_type=jnp.float32) + b1_ref[...]
    t = jnp.maximum(t, 0.0).astype(jnp.bfloat16)
    o_ref[...] = (jnp.dot(t, w2_ref[...],
                          preferred_element_type=jnp.float32) + b2_ref[...])


def pallas_rpn_fused(a, prep):
    """a: (M, K1) bf16 im2col of the feature map for the 3x3 RPN conv."""
    cp1, cp2 = prep["rpn_conv"], prep["rpn_head"]
    M, K1 = a.shape
    K1p, N1p = cp1["w"].shape
    K2p, N2p = cp2["w"].shape
    assert K1 <= K1p and N1p == K2p

    Mp0 = _round_up(M, 16)
    tm = min(256, Mp0)
    Mp = _round_up(Mp0, tm)
    if (Mp, K1p) != (M, K1):
        a_p = jnp.zeros((Mp, K1p), jnp.bfloat16).at[:M, :K1].set(a)
    else:
        a_p = a

    cost = pl.CostEstimate(
        flops=2 * Mp * (K1p * N1p + N1p * N2p),
        transcendentals=0,
        bytes_accessed=(Mp * K1p * 2 + K1p * N1p * 2 + N1p * N2p * 2
                        + Mp * N2p * 4),
    )

    out = pl.pallas_call(
        _rpn_fused_kernel,
        out_shape=jax.ShapeDtypeStruct((Mp, N2p), jnp.float32),
        grid=(Mp // tm,),
        in_specs=[
            pl.BlockSpec((tm, K1p), lambda i: (i, 0)),
            pl.BlockSpec((K1p, N1p), lambda i: (0, 0)),
            pl.BlockSpec((1, N1p), lambda i: (0, 0)),
            pl.BlockSpec((K2p, N2p), lambda i: (0, 0)),
            pl.BlockSpec((1, N2p), lambda i: (0, 0)),
        ],
        out_specs=pl.BlockSpec((tm, N2p), lambda i: (i, 0)),
        compiler_params=pltpu.CompilerParams(
            dimension_semantics=("parallel",),
            vmem_limit_bytes=32 * 1024 * 1024),
        cost_estimate=cost,
    )(a_p, cp1["w"], cp1["b"], cp2["w"], cp2["b"])
    return out[:M, :cp2["n"]]


# --------------------------------------------------------------------------
# Pallas kernel 3: fused ROI box head  (fc6 -> relu -> fc7 -> relu -> cls/bbox)
# --------------------------------------------------------------------------

def _box_head_kernel(x_ref, w6_ref, b6_ref, w7_ref, b7_ref, wp_ref, bp_ref,
                     o_ref):
    h = jnp.dot(x_ref[...], w6_ref[...],
                preferred_element_type=jnp.float32) + b6_ref[...]
    h = jnp.maximum(h, 0.0).astype(jnp.bfloat16)
    h = jnp.dot(h, w7_ref[...],
                preferred_element_type=jnp.float32) + b7_ref[...]
    h = jnp.maximum(h, 0.0).astype(jnp.bfloat16)
    o_ref[...] = jnp.dot(h, wp_ref[...],
                         preferred_element_type=jnp.float32) + bp_ref[...]


def pallas_box_head(pooled, prep):
    M = pooled.shape[0]
    Mp = _round_up(M, 16)
    head_in, head_in_p = prep["head_in"], prep["head_in_p"]
    fcp, np_pred = prep["fcp"], prep["np_pred"]

    x = pooled.astype(jnp.bfloat16)
    if (Mp, head_in_p) != (M, head_in):
        x_p = jnp.zeros((Mp, head_in_p), jnp.bfloat16).at[:M, :head_in].set(x)
    else:
        x_p = x

    cost = pl.CostEstimate(
        flops=2 * Mp * (head_in_p * fcp + fcp * fcp + fcp * np_pred),
        transcendentals=0,
        bytes_accessed=(Mp * head_in_p * 2 + head_in_p * fcp * 2
                        + fcp * fcp * 2 + fcp * np_pred * 2 + Mp * np_pred * 4),
    )

    out = pl.pallas_call(
        _box_head_kernel,
        out_shape=jax.ShapeDtypeStruct((Mp, np_pred), jnp.float32),
        grid=(1,),
        in_specs=[
            pl.BlockSpec((Mp, head_in_p), lambda i: (0, 0)),
            pl.BlockSpec((head_in_p, fcp), lambda i: (0, 0)),
            pl.BlockSpec((1, fcp), lambda i: (0, 0)),
            pl.BlockSpec((fcp, fcp), lambda i: (0, 0)),
            pl.BlockSpec((1, fcp), lambda i: (0, 0)),
            pl.BlockSpec((fcp, np_pred), lambda i: (0, 0)),
            pl.BlockSpec((1, np_pred), lambda i: (0, 0)),
        ],
        out_specs=pl.BlockSpec((Mp, np_pred), lambda i: (0, 0)),
        compiler_params=pltpu.CompilerParams(
            vmem_limit_bytes=32 * 1024 * 1024),
        cost_estimate=cost,
    )(x_p, prep["w6"], prep["b6"], prep["w7"], prep["b7"], prep["wp"],
      prep["bp"])
    return out[:M]


# --------------------------------------------------------------------------
# Conv2d = im2col (glue, bf16) + tiled Pallas GEMM (hot path)
# --------------------------------------------------------------------------

def im2col(x_bf16, kh, kw, stride, padding):
    """x: (B,H,W,Cin) bf16 -> ((B*Hout*Wout, kh*kw*Cin), Hout, Wout)."""
    B, H, W, Cin = x_bf16.shape
    Hout = (H + 2 * padding - kh) // stride + 1
    Wout = (W + 2 * padding - kw) // stride + 1
    xp = jnp.pad(x_bf16,
                 ((0, 0), (padding, padding), (padding, padding), (0, 0)))
    if kh == 1 and kw == 1 and stride == 1:
        return xp.reshape(B * Hout * Wout, Cin), Hout, Wout
    # TODO(synk): for large feature maps, fold im2col into the Pallas kernel
    # via manual row-slab DMA (memory_space=pl.ANY) to avoid the kh*kw HBM
    # blow-up; at these sizes the JAX glue below is cheap.
    patches = []
    for i in range(kh):
        for j in range(kw):
            patches.append(
                xp[:, i:i + Hout * stride:stride, j:j + Wout * stride:stride, :])
    patches = jnp.concatenate(patches, axis=-1)      # (B, Hout, Wout, kh*kw*Cin)
    return patches.reshape(B * Hout * Wout, kh * kw * Cin), Hout, Wout


def conv2d_nhwc(x, cp, stride=1, padding=0, act="none", out_dtype=jnp.float32):
    """x: (B,H,W,Cin); cp: pre-padded conv params from prepare_params."""
    B = x.shape[0]
    a, Hout, Wout = im2col(x.astype(jnp.bfloat16), cp["kh"], cp["kw"],
                           stride, padding)
    out = pallas_matmul_bias(a, cp["w"], cp["b"], cp["n"], act=act,
                             out_dtype=out_dtype)
    return out.reshape(B, Hout, Wout, cp["n"])


# --------------------------------------------------------------------------
# Box utilities (glue)
# --------------------------------------------------------------------------

_BBOX_XFORM_CLIP = math.log(1000.0 / 16.0)


def make_anchors(Hf, Wf, stride, sizes):
    cy = (jnp.arange(Hf, dtype=jnp.float32) + 0.5) * stride
    cx = (jnp.arange(Wf, dtype=jnp.float32) + 0.5) * stride
    cyg, cxg = jnp.meshgrid(cy, cx, indexing="ij")
    per_size = []
    for s in sizes:
        half = s / 2.0
        per_size.append(jnp.stack(
            [cxg - half, cyg - half, cxg + half, cyg + half], axis=-1))
    anchors = jnp.stack(per_size, axis=2)  # (Hf, Wf, A, 4)
    return anchors.reshape(-1, 4)


def decode_boxes(ref_boxes, deltas, weights=(1.0, 1.0, 1.0, 1.0)):
    wx, wy, ww, wh = weights
    widths = ref_boxes[..., 2] - ref_boxes[..., 0]
    heights = ref_boxes[..., 3] - ref_boxes[..., 1]
    ctr_x = ref_boxes[..., 0] + 0.5 * widths
    ctr_y = ref_boxes[..., 1] + 0.5 * heights
    dx = deltas[..., 0] / wx
    dy = deltas[..., 1] / wy
    dw = jnp.minimum(deltas[..., 2] / ww, _BBOX_XFORM_CLIP)
    dh = jnp.minimum(deltas[..., 3] / wh, _BBOX_XFORM_CLIP)
    pcx = dx * widths + ctr_x
    pcy = dy * heights + ctr_y
    pw = jnp.exp(dw) * widths
    ph = jnp.exp(dh) * heights
    return jnp.stack([pcx - 0.5 * pw, pcy - 0.5 * ph,
                      pcx + 0.5 * pw, pcy + 0.5 * ph], axis=-1)


def clip_boxes(boxes, img_h, img_w):
    x1 = jnp.clip(boxes[..., 0], 0.0, img_w - 1.0)
    y1 = jnp.clip(boxes[..., 1], 0.0, img_h - 1.0)
    x2 = jnp.clip(boxes[..., 2], 0.0, img_w - 1.0)
    y2 = jnp.clip(boxes[..., 3], 0.0, img_h - 1.0)
    return jnp.stack([x1, y1, x2, y2], axis=-1)


def roi_align(feat, boxes, spatial_scale, resolution, sampling_ratio):
    """feat: (Hf, Wf, C); boxes: (R, 4) x1,y1,x2,y2 in image coords."""
    # TODO(synk): RoIAlign bilinear gather is data-dependent; kept in JAX glue.
    # TODO(synk): omits aligned=True half-pixel offset of torchvision RoIAlign.
    Hf, Wf, C = feat.shape
    R = boxes.shape[0]
    x1 = boxes[:, 0] * spatial_scale
    y1 = boxes[:, 1] * spatial_scale
    x2 = boxes[:, 2] * spatial_scale
    y2 = boxes[:, 3] * spatial_scale
    roi_w = jnp.maximum(x2 - x1, 1.0)
    roi_h = jnp.maximum(y2 - y1, 1.0)
    bin_w = roi_w / resolution
    bin_h = roi_h / resolution

    ib = jnp.arange(resolution, dtype=jnp.float32)
    sp = jnp.arange(sampling_ratio, dtype=jnp.float32)
    ys = (y1[:, None, None] + ib[None, :, None] * bin_h[:, None, None]
          + (sp[None, None, :] + 0.5) * bin_h[:, None, None] / sampling_ratio)
    xs = (x1[:, None, None] + ib[None, :, None] * bin_w[:, None, None]
          + (sp[None, None, :] + 0.5) * bin_w[:, None, None] / sampling_ratio)
    S = resolution * sampling_ratio
    ys = ys.reshape(R, S)
    xs = xs.reshape(R, S)

    y = jnp.clip(ys, 0.0, Hf - 1.0)
    x = jnp.clip(xs, 0.0, Wf - 1.0)
    y0 = jnp.floor(y)
    x0 = jnp.floor(x)
    y1c = jnp.minimum(y0 + 1.0, Hf - 1.0)
    x1c = jnp.minimum(x0 + 1.0, Wf - 1.0)
    ly, lx = y - y0, x - x0
    hy, hx = 1.0 - ly, 1.0 - lx
    y0i, y1i = y0.astype(jnp.int32), y1c.astype(jnp.int32)
    x0i, x1i = x0.astype(jnp.int32), x1c.astype(jnp.int32)

    fv = feat.astype(jnp.float32)
    v00 = fv[y0i[:, :, None], x0i[:, None, :]]  # (R, S, S, C)
    v01 = fv[y0i[:, :, None], x1i[:, None, :]]
    v10 = fv[y1i[:, :, None], x0i[:, None, :]]
    v11 = fv[y1i[:, :, None], x1i[:, None, :]]
    w00 = (hy[:, :, None] * hx[:, None, :])[..., None]
    w01 = (hy[:, :, None] * lx[:, None, :])[..., None]
    w10 = (ly[:, :, None] * hx[:, None, :])[..., None]
    w11 = (ly[:, :, None] * lx[:, None, :])[..., None]
    vals = v00 * w00 + v01 * w01 + v10 * w10 + v11 * w11
    vals = vals.reshape(R, resolution, sampling_ratio,
                        resolution, sampling_ratio, C)
    return vals.mean(axis=(2, 4))  # (R, resolution, resolution, C)


# --------------------------------------------------------------------------
# Synthetic GeneralizedRCNN (backbone -> RPN -> ROI box head), inference mode
# --------------------------------------------------------------------------

CFG = dict(
    num_anchors=3,
    anchor_sizes=(8.0, 16.0, 32.0),
    feature_stride=4,
    pooler_resolution=4,          # cfg.MODEL.ROI_BOX_HEAD.POOLER_RESOLUTION
    pooler_scale=0.25,            # cfg.MODEL.ROI_BOX_HEAD.POOLER_SCALES
    pooler_sampling_ratio=2,      # cfg.MODEL.ROI_BOX_HEAD.POOLER_SAMPLING_RATIO
    num_proposals=8,
    num_classes=5,
    backbone_c1=16,
    backbone_c2=32,
    fc_dim=64,
)


def init_params(key, cfg):
    ks = jax.random.split(key, 16)
    A, nc = cfg["num_anchors"], cfg["num_classes"]
    c1, c2, fc = cfg["backbone_c1"], cfg["backbone_c2"], cfg["fc_dim"]
    res = cfg["pooler_resolution"]
    head_in = c2 * res * res
    n = lambda k, s, sc: (jax.random.normal(k, s, jnp.float32) * sc)
    return dict(
        bb_w1=n(ks[0], (c1, 3, 3, 3), 0.1), bb_b1=jnp.zeros((c1,)),
        bb_w2=n(ks[1], (c2, c1, 3, 3), 0.05), bb_b2=jnp.zeros((c2,)),
        rpn_w=n(ks[2], (c2, c2, 3, 3), 0.05), rpn_b=jnp.zeros((c2,)),
        rpn_cls_w=n(ks[3], (A, c2, 1, 1), 0.05), rpn_cls_b=jnp.zeros((A,)),
        rpn_bbox_w=n(ks[4], (4 * A, c2, 1, 1), 0.05), rpn_bbox_b=jnp.zeros((4 * A,)),
        fc6_w=n(ks[5], (fc, head_in), 0.02), fc6_b=jnp.zeros((fc,)),
        fc7_w=n(ks[6], (fc, fc), 0.05), fc7_b=jnp.zeros((fc,)),
        cls_w=n(ks[7], (nc, fc), 0.05), cls_b=jnp.zeros((nc,)),
        bbox_w=n(ks[8], (4 * nc, fc), 0.02), bbox_b=jnp.zeros((4 * nc,)),
    )


def _prep_conv(w, b):
    """(Cout,Cin,kh,kw) PyTorch conv -> pre-padded bf16 GEMM weight + f32 bias."""
    Cout, Cin, kh, kw = w.shape
    K = kh * kw * Cin
    Kp, Np = _round_up(K, 128), _round_up(Cout, 128)
    wg = jnp.transpose(w, (2, 3, 1, 0)).reshape(K, Cout).astype(jnp.bfloat16)
    w_p = jnp.zeros((Kp, Np), jnp.bfloat16).at[:K, :Cout].set(wg)
    b_p = jnp.zeros((1, Np), jnp.float32).at[0, :Cout].set(
        b.astype(jnp.float32))
    return dict(w=w_p, b=b_p, kh=kh, kw=kw, k=K, n=Cout)


def prepare_params(params, cfg):
    """One-time weight conversion: transpose/fuse/pad/cast so the per-forward
    path does no weight shuffling (hoisted out of the hot loop)."""
    A, nc, fc = cfg["num_anchors"], cfg["num_classes"], cfg["fc_dim"]
    c2, res = cfg["backbone_c2"], cfg["pooler_resolution"]
    head_in = c2 * res * res

    # Backbone + RPN convs, pre-padded once.
    conv1 = _prep_conv(params["bb_w1"], params["bb_b1"])
    conv2 = _prep_conv(params["bb_w2"], params["bb_b2"])
    rpn_conv = _prep_conv(params["rpn_w"], params["rpn_b"])

    # Fused RPN 1x1 head: (cls || bbox) along the output-channel axis.
    rpn_head_w = jnp.concatenate(
        [params["rpn_cls_w"], params["rpn_bbox_w"]], axis=0)      # (5A, c2,1,1)
    rpn_head_b = jnp.concatenate(
        [params["rpn_cls_b"], params["rpn_bbox_b"]], axis=0)
    rpn_head = _prep_conv(rpn_head_w, rpn_head_b)

    # Fused + pre-padded box head weights (bf16) and biases (f32).
    head_in_p = _round_up(head_in, 128)
    fcp = _round_up(fc, 128)
    np_pred = _round_up(5 * nc, 128)
    # Permute fc6 input rows from NCHW-flatten (C,res,res) to NHWC-flatten
    # (res,res,C) so pooled features need no runtime transpose.
    w6 = (params["fc6_w"].reshape(fc, c2, res, res)
          .transpose(0, 2, 3, 1).reshape(fc, head_in)).T.astype(jnp.bfloat16)
    w7 = params["fc7_w"].T.astype(jnp.bfloat16)                   # (fc, fc)
    wp = jnp.concatenate([params["cls_w"], params["bbox_w"]],
                         axis=0).T.astype(jnp.bfloat16)           # (fc, 5nc)
    w6_p = jnp.zeros((head_in_p, fcp), jnp.bfloat16).at[:head_in, :fc].set(w6)
    w7_p = jnp.zeros((fcp, fcp), jnp.bfloat16).at[:fc, :fc].set(w7)
    wp_p = jnp.zeros((fcp, np_pred), jnp.bfloat16).at[:fc, :5 * nc].set(wp)
    b6_p = jnp.zeros((1, fcp), jnp.float32).at[0, :fc].set(params["fc6_b"])
    b7_p = jnp.zeros((1, fcp), jnp.float32).at[0, :fc].set(params["fc7_b"])
    bp_p = (jnp.zeros((1, np_pred), jnp.float32)
            .at[0, :nc].set(params["cls_b"])
            .at[0, nc:5 * nc].set(params["bbox_b"]))

    return dict(
        conv1=conv1, conv2=conv2, rpn_conv=rpn_conv, rpn_head=rpn_head,
        w6=w6_p, b6=b6_p, w7=w7_p, b7=b7_p, wp=wp_p, bp=bp_p,
        head_in=head_in, head_in_p=head_in_p, fcp=fcp, np_pred=np_pred,
    )


def generalized_rcnn_forward(prep, images_nchw, cfg):
    """Inference forward: images (B, 3, H, W) NCHW -> dict of boxes/scores/labels."""
    # TODO(synk): training-mode losses, DA heads and NMS post-processing are not
    # implemented (dynamic-shape / loss-only paths); inference result path only.
    B, _, H, W = images_nchw.shape
    x = jnp.transpose(images_nchw, (0, 2, 3, 1))                    # NHWC

    # ---- backbone (two strided 3x3 convs + ReLU), GEMMs in Pallas, bf16 out --
    f1 = conv2d_nhwc(x, prep["conv1"], 2, 1, "relu", out_dtype=jnp.bfloat16)
    feat = conv2d_nhwc(f1, prep["conv2"], 2, 1, "relu", out_dtype=jnp.bfloat16)
    _, Hf, Wf, Cf = feat.shape

    # ---- RPN: 3x3 conv + fused cls/bbox 1x1 head in ONE Pallas call ----
    a_rpn, _, _ = im2col(feat, 3, 3, 1, 1)                          # (B*Hf*Wf, 9*Cf)
    A = cfg["num_anchors"]
    rpn_out = pallas_rpn_fused(a_rpn, prep).reshape(B, Hf, Wf, 5 * A)
    logits = rpn_out[..., :A]                                       # (B,Hf,Wf,A)
    deltas = rpn_out[..., A:]                                       # (B,Hf,Wf,4A)

    anchors = make_anchors(Hf, Wf, cfg["feature_stride"], cfg["anchor_sizes"])
    scores = jax.nn.sigmoid(logits.reshape(B, Hf * Wf * A))
    deltas = deltas.reshape(B, Hf * Wf * A, 4)
    decoded = decode_boxes(anchors[None], deltas)
    decoded = clip_boxes(decoded, float(H), float(W))

    R = cfg["num_proposals"]
    top_scores, top_idx = jax.lax.top_k(scores, R)                      # (B, R)
    proposals = jnp.take_along_axis(decoded, top_idx[..., None], axis=1)  # (B,R,4)

    # ---- Pooler (RoIAlign) ----
    pooled = jax.vmap(
        lambda f, b: roi_align(f, b, cfg["pooler_scale"],
                               cfg["pooler_resolution"],
                               cfg["pooler_sampling_ratio"]))(feat, proposals)
    # pooled: (B, R, res, res, Cf) -> flattened in NHWC order; fc6 weights were
    # permuted to this layout in prepare_params (no runtime transpose).
    pooled = pooled.reshape(B * R, -1)

    # ---- ROI box head: fully fused (fc6 -> fc7 -> cls/bbox) Pallas kernel ----
    nc = cfg["num_classes"]
    head_out = pallas_box_head(pooled, prep)                   # (B*R, >=5nc)
    cls_logits = head_out[:, :nc]
    bbox_pred = head_out[:, nc:5 * nc]

    probs = jax.nn.softmax(cls_logits, axis=-1)                 # (B*R, nc)
    fg_probs = probs[:, 1:]
    labels = jnp.argmax(fg_probs, axis=-1) + 1                  # skip background
    det_scores = jnp.max(fg_probs, axis=-1)
    box_deltas = bbox_pred.reshape(B * R, nc, 4)
    sel_deltas = jnp.take_along_axis(
        box_deltas, labels[:, None, None], axis=1).squeeze(1)   # (B*R, 4)
    final = decode_boxes(proposals.reshape(B * R, 4), sel_deltas,
                         weights=(10.0, 10.0, 5.0, 5.0))
    final = clip_boxes(final, float(H), float(W))

    return dict(
        boxes=final.reshape(B, R, 4),
        scores=det_scores.reshape(B, R),
        labels=labels.reshape(B, R),
        proposals=proposals,
        proposal_scores=top_scores,
    )


# --------------------------------------------------------------------------

if __name__ == "__main__":
    key = jax.random.PRNGKey(0)
    pkey, ikey = jax.random.split(key)
    params = init_params(pkey, CFG)
    prep = prepare_params(params, CFG)
    images = jax.random.normal(ikey, (2, 3, 32, 32), jnp.float32)  # NCHW

    result = generalized_rcnn_forward(prep, images, CFG)
    jax.block_until_ready(result)

    assert result["boxes"].shape == (2, CFG["num_proposals"], 4)
    assert result["scores"].shape == (2, CFG["num_proposals"])
    assert result["labels"].shape == (2, CFG["num_proposals"])
    assert bool(jnp.all(jnp.isfinite(result["boxes"])))
    assert bool(jnp.all(jnp.isfinite(result["scores"])))
    print("KERNEL_OK")
</pallas_src>

<mosaic_0001>
module attributes {stable_mosaic.version = 11 : i64} {
  func.func @_mm_kernel_acc(%arg0: i32, %arg1: i32, %arg2: i32, %arg3: memref<256x128xbf16, #tpu.memory_space<vmem>>, %arg4: memref<128x128xbf16, #tpu.memory_space<vmem>>, %arg5: memref<1x128xf32, #tpu.memory_space<vmem>>, %arg6: memref<256x128xbf16, #tpu.memory_space<vmem>>, %arg7: memref<256x128xf32, #tpu.memory_space<vmem>>) attributes {dimension_semantics = [#tpu.dimension_semantics<parallel>, #tpu.dimension_semantics<parallel>, #tpu.dimension_semantics<arbitrary>], iteration_bounds = array<i64: 2, 1, 1>, scalar_prefetch = 0 : i64, scratch_operands = 1 : i64, tpu.core_type = #tpu.core_type<tc>, window_params = [{transform_indices = @transform_0, window_bounds = array<i64: 256, 128>}, {transform_indices = @transform_1, window_bounds = array<i64: 128, 128>}, {transform_indices = @transform_2, window_bounds = array<i64: 1, 128>}, {transform_indices = @transform_3, window_bounds = array<i64: 256, 128>}]} {
    %c0_i32 = arith.constant 0 : i32
    %0 = arith.cmpi eq, %arg2, %c0_i32 : i32
    %1 = arith.extui %0 : i1 to i32
    %c0_i32_0 = arith.constant 0 : i32
    %2 = arith.cmpi ne, %1, %c0_i32_0 : i32
    scf.if %2 {
      %cst_10 = arith.constant 0.000000e+00 : f32
      %12 = vector.broadcast %cst_10 : f32 to vector<256x128xf32>
      %c0_11 = arith.constant 0 : index
      %c0_12 = arith.constant 0 : index
      %13 = vector.load %arg7[%c0_11, %c0_12] : memref<256x128xf32, #tpu.memory_space<vmem>>, vector<256x128xf32>
      tpu.vector_store %arg7[%c0_11, %c0_12], %12 {strides = array<i32>} : memref<256x128xf32, #tpu.memory_space<vmem>>, vector<256x128xf32>,
    } else {
    }
    %c0 = arith.constant 0 : index
    %c0_1 = arith.constant 0 : index
    %3 = vector.load %arg7[%c0, %c0_1] : memref<256x128xf32, #tpu.memory_space<vmem>>, vector<256x128xf32>
    %c0_2 = arith.constant 0 : index
    %c0_3 = arith.constant 0 : index
    %4 = vector.load %arg3[%c0_2, %c0_3] : memref<256x128xbf16, #tpu.memory_space<vmem>>, vector<256x128xbf16>
    %c0_4 = arith.constant 0 : index
    %c0_5 = arith.constant 0 : index
    %5 = vector.load %arg4[%c0_4, %c0_5] : memref<128x128xbf16, #tpu.memory_space<vmem>>, vector<128x128xbf16>
    %cst = arith.constant dense<0.000000e+00> : vector<256x128xf32>
    %6 = tpu.matmul %4, %5, %cst {dimension_numbers = #tpu.dot_dimension_numbers<[1], [0], [0], [1], [0, 0, 1, 1], [], []>} : vector<256x128xbf16>, vector<128x128xbf16>, vector<256x128xf32> -> vector<256x128xf32>
    %7 = arith.addf %3, %6 : vector<256x128xf32>
    %c0_6 = arith.constant 0 : index
    %c0_7 = arith.constant 0 : index
    %8 = vector.load %arg7[%c0_6, %c0_7] : memref<256x128xf32, #tpu.memory_space<vmem>>, vector<256x128xf32>
    tpu.vector_store %arg7[%c0_6, %c0_7], %7 {strides = array<i32>} : memref<256x128xf32, #tpu.memory_space<vmem>>, vector<256x128xf32>,
    %c0_i32_8 = arith.constant 0 : i32
    %9 = arith.cmpi eq, %arg2, %c0_i32_8 : i32
    %10 = arith.extui %9 : i1 to i32
    %c0_i32_9 = arith.constant 0 : i32
    %11 = arith.cmpi ne, %10, %c0_i32_9 : i32
    scf.if %11 {
      %c0_10 = arith.constant 0 : index
      %c0_11 = arith.constant 0 : index
      %12 = vector.load %arg7[%c0_10, %c0_11] : memref<256x128xf32, #tpu.memory_space<vmem>>, vector<256x128xf32>
      %c0_12 = arith.constant 0 : index
      %c0_13 = arith.constant 0 : index
      %13 = vector.load %arg5[%c0_12, %c0_13] : memref<1x128xf32, #tpu.memory_space<vmem>>, vector<1x128xf32>
      %14 = vector.broadcast %13 : vector<1x128xf32> to vector<256x128xf32>
      %15 = arith.addf %12, %14 : vector<256x128xf32>
      %cst_14 = arith.constant 0.000000e+00 : f32
      %16 = vector.broadcast %cst_14 : f32 to vector<256x128xf32>
      %17 = arith.maximumf %15, %16 : vector<256x128xf32>
      %18 = arith.truncf %17 : vector<256x128xf32> to vector<256x128xbf16>
      %c0_15 = arith.constant 0 : index
      %c0_16 = arith.constant 0 : index
      %19 = vector.load %arg6[%c0_15, %c0_16] : memref<256x128xbf16, #tpu.memory_space<vmem>>, vector<256x128xbf16>
      tpu.vector_store %arg6[%c0_15, %c0_16], %18 {strides = array<i32>} : memref<256x128xbf16, #tpu.memory_space<vmem>>, vector<256x128xbf16>,
    } else {
    }
    return
  }
  func.func @transform_0(%arg0: i32, %arg1: i32, %arg2: i32) -> (i32, i32) {
    %c0_i32 = arith.constant 0 : i32
    return %arg0, %arg2 : i32, i32
  }
  func.func @transform_1(%arg0: i32, %arg1: i32, %arg2: i32) -> (i32, i32) {
    %c0_i32 = arith.constant 0 : i32
    return %arg2, %arg1 : i32, i32
  }
  func.func @transform_2(%arg0: i32, %arg1: i32, %arg2: i32) -> (i32, i32) {
    %c0_i32 = arith.constant 0 : i32
    %c0_i32_0 = arith.constant 0 : i32
    return %c0_i32, %arg1 : i32, i32
  }
  func.func @transform_3(%arg0: i32, %arg1: i32, %arg2: i32) -> (i32, i32) {
    %c0_i32 = arith.constant 0 : i32
    return %arg0, %arg1 : i32, i32
  }
}

</mosaic_0001>

<bundles_post_ra>
// kernel: tpu_custom_call.1
= control target key start
LH: loop header
LB: loop body
LE: loop exit
PB: predicated region body
PF: predicated region fallthrough
CT: control target
= control target key end

     0   :  { %8 = vsyncpa [#allocation4], 0  ;;  %s2006_s0 = inlined_call_operand.hbm [shape: bf16[512,128], index: 0, kind: input, shape index: {}]   ;;  %s2007_s1 = inlined_call_operand.hbm [shape: bf16[128,128], index: 1, kind: input, shape index: {}]   ;;  %s2008_s2 = inlined_call_operand.vmem [shape: f32[1,128], index: 2, kind: input, shape index: {}]   ;;  %s2009_s3 = inlined_call_operand.hbm [shape: bf16[512,128], index: 3, kind: output, shape index: {}]  }
   0x1   :  { %10 = vsyncpa [#allocation4 + $0x1], 0 }
   0x2   :  { %11 = vsyncpa [#allocation7], 0 }
   0x3   :  { %12 = vsyncpa [#allocation5], 0 }
   0x4   :  { %14 = vsyncpa [#allocation5 + $0x1], 0  ;;  %s1703_s12 = smov 0   ;;  %s1705_s13 = smov 0  }
   0x5   :  { %s1707_s14 = smov 0   ;;  %s1709_s15 = smov 0  }
   0x6   :  { %s1711_s16 = smov 0   ;;  %s1713_s17 = smov 0  }
   0x7 LB: > { %s1137_s18 = sadd.s32 4294967295, %s1674_s17   ;;  %s1138_s19 = sadd.s32 4294967294, %s1674_s17   ;;  %s1674_s17 = sphi %s1713_s17, %s20_s17   ;;  %s1670_s16 = sphi %s1711_s16, %s2033_s16   ;;  %s1666_s15 = sphi %s1709_s15, %s2032_s15   ;;  %s1662_s14 = sphi %s1707_s14, %s2031_s14   ;;  %s1658_s13 = sphi %s1705_s13, %s2030_s13   ;;  %s1654_s12 = sphi %s1703_s12, %s2029_s12  }
   0x8   : > { %p61_p0 = scmp.ne.s32.totalorder %s1658_s13, %s1654_s12  ;;  %p1737_p1 = scmp.eq.s32.totalorder %s1137_s18, 0 }
   0x9   : > { %p1741_p2 = scmp.eq.s32.totalorder %s1137_s18, 1  ;;  %p147_p3 = scmp.eq.s32.totalorder %s1138_s19, 1 }
   0xa   : > { %s2014_s20 = scalar_select %p1737_p1, 1, 0 }
   0xb   : > { %s2015_s21 = scalar_select %p1741_p2, 1, 0 }
   0xc   : > { %p1747_p4 = por %p1737_p1, %p61_p0  ;;  %p1139_p5 = scmp.ge.s32.totalorder %s1674_s17, 1 }
   0xd   : > { %p1752_p6 = por %p147_p3, %p61_p0  ;;  %p154_p7 = scmp.lt.s32.totalorder %s1674_s17, 3 }
   0xe   : > { %s2016_s22 = scalar_select %p1747_p4, 1, 0 }
   0xf   : > { %s2017_s23 = scalar_select %p1752_p6, 1, 0 }
  0x10   : > { %p1757_p8 = pnand %p1139_p5, %p154_p7  ;;  %s1676_s25 = smov [#allocation6]  }
  0x11   : > { %s170_s26 = sshll.u32 %s1676_s25, 4  ;;  %s39_s28 = sadd.s32 1, %s1670_s16  ;;  %s171_s26 = int_to_ptr.vmem [resolvable:$true] %s170_s26 }
  0x12   : > { %s2018_s24 = scalar_select %p1757_p8, 1, 0 }
  0x13   : > { %p1437_p9 = pneg %p1757_p8  ;;  %s1530_s4 = scalar_lea.hbm %s2007_s1, 1024 }
  0x14   : > { %p1531_p12 = scmp.ne.s32.totalorder %s2007_s1, %s1530_s4  ;;  %p1537_p5 = scmp.lt.u32.totalorder %s1530_s4, %s2007_s1 }
  0x15   : > { %p1766_p11 = pnand %p1437_p9, %p1737_p1 }
  0x17   : > { %p1532_p13 = pneg %p1766_p11 }
  0x19   : > { %p1533_p0 = pnand %p1532_p13, %p1531_p12 }
  0x1b   : > { %p1534_p3 = pneg %p1533_p0 }
  0x1d   : > { %p1539_p7 = pnand %p1537_p5, %p1534_p3 }
  0x1f   : > { %1542 = shalt.err (!%p1539_p7)
}
  0x20   : > { %s1543_s9 = scalar_lea.vmem %s171_s26, 1024  ;;  %p1551_p1 = scmp.lt.s32.totalorder %s171_s26, %s171_s26 }
  0x21   : > { %p1544_p9 = scmp.ne.s32.totalorder %s171_s26, %s1543_s9  ;;  %p1552_p4 = scmp.lt.s32.totalorder %s1543_s9, %s1543_s9 }
  0x23   : > { %p1546_p10 = pnand %p1544_p9, %p1532_p13  ;;  %p1553_p8 = por %p1552_p4, %p1551_p1 }
  0x25   : > { %p1547_p6 = pneg %p1546_p10 }
  0x27   : > { %p1554_p2 = pnand %p1553_p8, %p1547_p6 }
  0x29   : > { %1557 = shalt.err (!%p1554_p2)
}
  0x2a   : > { %s1677_s10 = smov 64   ;;  %s1678_s11 = smov 4  }
  0x2b   : > { %1440 = dma.hbm_to_vmem [thread:$0]  (!%p1766_p11), %s2007_s1, 1024, %s171_s26, [#allocation7], %s1677_s10, %s1677_s10, %s1678_s11  }
  0x2c   : > { %p41_p1 = scmp.ge.s32.totalorder %s39_s28, 2  ;;  %s48_s25 = sadd.s32 1, %s1662_s14 }
  0x2d   : > { %p55_p2 = scmp.ne.s32.totalorder %s1662_s14, %s1658_s13  ;;  %p56_p4 = scmp.eq.s32.totalorder %s1674_s17, 0 }
  0x2e   : > { %s2035_s28 = smov (%p41_p1, %s39_s28), 0  ;;  %p2021_p8 = scmp.ne.s32.totalorder %s2015_s21, 0 }
  0x2f   : > { %p1796_p6 = por %p56_p4, %p55_p2  ;;  %s43_s30 = ssub.s32 %s1670_s16, %s2035_s28 }
  0x30   : > { %p1802_p10 = por %p2021_p8, %p55_p2  ;;  %p1450_p12 = scmp.lt.s32.totalorder %s1674_s17, 2 }
  0x31   : > { %p46_p11 = scmp.eq.s32.totalorder %s43_s30, 0  ;;  %s190_s26 = sand.u32 1, %s1662_s14  }
  0x32   : > { %s1143_s4 = sshll.u32 %s190_s26, 7  ;;  %s1212_s6 = sshll.u32 %s1670_s16, 11 }
  0x33   : > { %s1811_s5 = scalar_select %p46_p11, %s1662_s14, %s48_s25  }
  0x34   : > { %s1817_s9 = scalar_lea.hbm %s2006_s0, %s1212_s6  ;;  %s194_s21 = scalar_lea.vmem [#allocation3], %s1143_s4 }
  0x35   : > { %s202_s18 = sshll.u32 %s194_s21, 4  ;;  %p1823_p13 = pnand %p1450_p12, %p1796_p6  ;;  %s1819_s18 = int_to_ptr.vmem [resolvable:$true] %s202_s18 }
  0x36   : > { %s1827_s25 = scalar_lea.sflag [#allocation4], %s190_s26  ;;  %s1558_s30 = scalar_lea.hbm %s1817_s9, 2048 }
  0x37   : > { %p1559_p0 = scmp.ne.s32.totalorder %s1817_s9, %s1558_s30  ;;  %p1560_p3 = pneg %p1823_p13 }
  0x38   : > { %s1563_s29 = scalar_lea.hbm %s2006_s0, 4096  ;;  %p1564_p9 = scmp.lt.u32.totalorder %s1817_s9, %s2006_s0 }
  0x39   : > { %p1561_p5 = pnand %p1560_p3, %p1559_p0  ;;  %p1565_p1 = scmp.lt.u32.totalorder %s1563_s29, %s1558_s30 }
  0x3a   : > { %p1567_p4 = scmp.lt.u32.totalorder %s1558_s30, %s1817_s9 }
  0x3b   : > { %p1562_p7 = pneg %p1561_p5  ;;  %p1566_p2 = por %p1565_p1, %p1564_p9 }
  0x3d   : > { %p1568_p6 = por %p1567_p4, %p1566_p2 }
  0x3f   : > { %p1569_p8 = pnand %p1568_p6, %p1562_p7 }
  0x41   : > { %1572 = shalt.err (!%p1569_p8)
}
  0x42   : > { %s1573_s26 = scalar_lea.vmem %s1819_s18, 2048  ;;  %s1679_s21 = smov [#allocation3]  }
  0x43   : > { %p1574_p12 = scmp.ne.s32.totalorder %s1819_s18, %s1573_s26  ;;  %s1578_s4 = sshll.u32 %s1679_s21, 4  ;;  %s1579_s4 = int_to_ptr.vmem [resolvable:$false] %s1578_s4 }
  0x44   : > { %s1580_s6 = scalar_lea.vmem %s1579_s4, 4096  ;;  %p1581_p5 = scmp.lt.s32.totalorder %s1819_s18, %s1579_s4 }
  0x45   : > { %p1576_p11 = pnand %p1574_p12, %p1560_p3  ;;  %p1582_p9 = scmp.lt.s32.totalorder %s1580_s6, %s1573_s26 }
  0x47   : > { %p1577_p0 = pneg %p1576_p11  ;;  %p1583_p1 = por %p1582_p9, %p1581_p5 }
  0x49   : > { %p1584_p2 = pnand %p1583_p1, %p1577_p0 }
  0x4b   : > { %1587 = shalt.err (!%p1584_p2)
}
  0x4c   : > { %1444 = dma.hbm_to_vmem [thread:$0]  (!%p1823_p13), %s1817_s9, 2048, %s1819_s18, %s1827_s25, %s1677_s10, %s1677_s10, %s1678_s11  }
  0x4d   : > { %p2024_p3 = scmp.ne.s32.totalorder %s2018_s24, 0 }
  0x4e   : > { %s1861_s30 = sand.u32 (!%p2024_p3), 1, %s1658_s13   ;;  %p2025_p7 = scmp.ne.s32.totalorder (!%p2024_p3), %s2016_s22, 0 }
  0x4f   : > { %214 = sbr.rel (%p2024_p3) target bundleno = 383 (0x17f), region = 32  ;;  %s1147_s29 = sshll.u32 (!%p2024_p3), %s1861_s30, 7 }
  0x50   : > { %s217_s7 = scalar_lea.sflag (!%p2024_p3), [#allocation4], %s1861_s30  ;;  %s1867_s19 = scalar_lea.vmem (!%p2024_p3), [#allocation3], %s1147_s29 }
  0x56   : > { %1641 = dma.done.wait (%p2025_p7), %s217_s7, 2048  }
  0x57   : > { %1643 = vsyncadd (%p2025_p7), %s217_s7, 4294965248  ;;  %p2026_p13 = scmp.ne.s32.totalorder %s2014_s20, 0 }
  0x59   : > { %1645 = dma.done.wait (%p2026_p13), [#allocation7], 1024  }
  0x5a   : > { %1647 = vsyncadd (%p2026_p13), [#allocation7], 4294966272  ;;  %v1506_v0 = vld [vmem:[#allocation6] sm:$0xff]   ;;  %v1507_v1 = vld [vmem:[#allocation6 + $0x8] sm:$0xff]   ;;  %s1908_s24 = scalar_lea.vmem [#allocation8], %s1147_s29  ;;  %s1245_s10 = sshll.u32 %s1666_s15, 11 }
  0x5b   : > { %1365 = vmatprep.subr.bf16.mxu0 %v1506_v0  ;;  %1413 = vmatprep.subr.bf16.mxu1 %v1506_v0  ;;  %v1508_v2 = vld [vmem:[#allocation6 + $0x10] sm:$0xff]   ;;  %v1509_v3 = vld [vmem:[#allocation6 + $0x18] sm:$0xff]   ;;  %v1514_v4 = vld [vmem:[%s1867_s19] sm:$0xff]   ;;  %s1023_s11 = sshll.u32 %s1908_s24, 4  ;;  %s1951_s15 = scalar_lea.hbm %s2009_s3, %s1245_s10  ;;  %s1953_s11 = int_to_ptr.vmem [resolvable:$true] %s1023_s11 }
  0x5c   : > { %1366 = vmatpush3.bf16.msra.mxu0 %v1506_v0  ;;  %1421 = vmatpush3.bf16.msra.mxu1 %v1506_v0  ;;  %v1515_v5 = vld [vmem:[%s1867_s19 + $0x40] sm:$0xff]   ;;  %v1511_v7 = vld [vmem:[#allocation6 + $0x28] sm:$0xff]   ;;  %v1512_v8 = vld [vmem:[#allocation6 + $0x30] sm:$0xff]   ;;  %s1009_s25 = scalar_lea.sflag [#allocation5], %s1861_s30  ;;  %s1588_s8 = scalar_lea.vmem %s1953_s11, 2048 }
  0x5d   : > { %1367 = vmatprep.subr.bf16.mxu0 %v1507_v1  ;;  %1414 = vmatprep.subr.bf16.mxu1 %v1507_v1  ;;  %v1510_v6 = vld [vmem:[#allocation6 + $0x20] sm:$0xff]   ;;  %v1513_v9 = vld [vmem:[#allocation6 + $0x38] sm:$0xff]   ;;  %v1516_v10 = vld [vmem:[%s1867_s19 + $0x8] sm:$0xff]   ;;  %p1589_p4 = scmp.ne.s32.totalorder %s1953_s11, %s1588_s8  ;;  %s1680_s26 = smov [#allocation8]  }
  0x5e   : > { %1381 = vmatprep.mubr.bf16.mxu0 %v1514_v4  ;;  %1397 = vmatprep.mubr.bf16.mxu1 %v1515_v5  ;;  %v1517_v11 = vld [vmem:[%s1867_s19 + $0x48] sm:$0xff]   ;;  %v1518_v12 = vld [vmem:[%s1867_s19 + $0x10] sm:$0xff]   ;;  %v1520_v14 = vld [vmem:[%s1867_s19 + $0x18] sm:$0xff]   ;;  %s1592_s21 = sshll.u32 %s1680_s26, 4  ;;  %s1593_s21 = int_to_ptr.vmem [resolvable:$false] %s1592_s21 }
  0x5f   : > { %v1519_v13 = vld [vmem:[%s1867_s19 + $0x50] sm:$0xff]   ;;  %v1521_v15 = vld [vmem:[%s1867_s19 + $0x58] sm:$0xff]   ;;  %v1522_v16 = vld [vmem:[%s1867_s19 + $0x20] sm:$0xff]   ;;  %p1590_p6 = pnand %p1589_p4, %p1802_p10  ;;  %s1594_s4 = scalar_lea.vmem %s1593_s21, 4096 }
  0x60   : > { %1368 = vmatpush3.bf16.msra.mxu0 %v1507_v1  ;;  %1422 = vmatpush3.bf16.msra.mxu1 %v1507_v1  ;;  %v1523_v17 = vld [vmem:[%s1867_s19 + $0x60] sm:$0xff]   ;;  %v1524_v18 = vld [vmem:[%s1867_s19 + $0x28] sm:$0xff]   ;;  %v1526_v20 = vld [vmem:[%s1867_s19 + $0x30] sm:$0xff]   ;;  %p1595_p12 = scmp.lt.s32.totalorder %s1953_s11, %s1593_s21  ;;  %p1596_p11 = scmp.lt.s32.totalorder %s1594_s4, %s1588_s8 }
  0x61   : > { %1369 = vmatprep.subr.bf16.mxu0 %v1508_v2  ;;  %1415 = vmatprep.subr.bf16.mxu1 %v1508_v2  ;;  %v1525_v19 = vld [vmem:[%s1867_s19 + $0x68] sm:$0xff]   ;;  %v1527_v21 = vld [vmem:[%s1867_s19 + $0x70] sm:$0xff]   ;;  %v1528_v22 = vld [vmem:[%s1867_s19 + $0x38] sm:$0xff]   ;;  %p1591_p8 = pneg %p1590_p6 }
  0x62   : > { %v1529_v23 = vld [vmem:[%s1867_s19 + $0x78] sm:$0xff]   ;;  %v1896_v24 = vld [vmem:[%s2008_s2] ss:$0 sm:$0xff]  ;;  %p1597_p0 = por %p1596_p11, %p1595_p12 }
  0x64   : > { %1370 = vmatpush3.bf16.msra.mxu0 %v1508_v2  ;;  %1423 = vmatpush3.bf16.msra.mxu1 %v1508_v2  ;;  %p1598_p5 = pnand %p1597_p0, %p1591_p8 }
  0x65   : > { %1371 = vmatprep.subr.bf16.mxu0 %v1509_v3  ;;  %1416 = vmatprep.subr.bf16.mxu1 %v1509_v3 }
  0x68   : > { %1372 = vmatpush3.bf16.msra.mxu0 %v1509_v3  ;;  %1424 = vmatpush3.bf16.msra.mxu1 %v1509_v3 }
  0x69   : > { %1373 = vmatprep.subr.bf16.mxu0 %v1510_v6  ;;  %1417 = vmatprep.subr.bf16.mxu1 %v1510_v6 }
  0x6c   : > { %1374 = vmatpush3.bf16.msra.mxu0 %v1510_v6  ;;  %1425 = vmatpush3.bf16.msra.mxu1 %v1510_v6 }
  0x6d   : > { %1375 = vmatprep.subr.bf16.mxu0 %v1511_v7  ;;  %1418 = vmatprep.subr.bf16.mxu1 %v1511_v7 }
  0x70   : > { %1376 = vmatpush3.bf16.msra.mxu0 %v1511_v7  ;;  %1426 = vmatpush3.bf16.msra.mxu1 %v1511_v7 }
  0x71   : > { %1377 = vmatprep.subr.bf16.mxu0 %v1512_v8  ;;  %1419 = vmatprep.subr.bf16.mxu1 %v1512_v8 }
  0x74   : > { %1378 = vmatpush3.bf16.msra.mxu0 %v1512_v8  ;;  %1427 = vmatpush3.bf16.msra.mxu1 %v1512_v8 }
  0x75   : > { %1379 = vmatprep.subr.bf16.mxu0 %v1513_v9  ;;  %1420 = vmatprep.subr.bf16.mxu1 %v1513_v9 }
  0x78   : > { %1380 = vmatpush3.bf16.msra.mxu0 %v1513_v9  ;;  %1428 = vmatpush3.bf16.msra.mxu1 %v1513_v9 }
  0x7b   : > { %1382 = vmatmul.mubr.bf16.vlgmr.msra.gmra.mrb[0].mxu0 %v1516_v10  ;;  %1398 = vmatmul.mubr.bf16.vlgmr.msra.gmra.mrb[0].mxu1 %v1517_v11 }
  0x7c   : > { %1385 = vmatprep.mubr.bf16.mxu0 %v1518_v12  ;;  %1401 = vmatprep.mubr.bf16.mxu1 %v1519_v13 }
  0x83   : > { %1386 = vmatmul.mubr.bf16.gmra.mrb[4].mxu0 %v1520_v14  ;;  %1402 = vmatmul.mubr.bf16.gmra.mrb[4].mxu1 %v1521_v15 }
  0x84   : > { %1389 = vmatprep.mubr.bf16.mxu0 %v1522_v16  ;;  %1405 = vmatprep.mubr.bf16.mxu1 %v1523_v17 }
  0x8b   : > { %1390 = vmatmul.mubr.bf16.gmra.mrb[8].mxu0 %v1524_v18  ;;  %1406 = vmatmul.mubr.bf16.gmra.mrb[8].mxu1 %v1525_v19 }
  0x8c   : > { %1393 = vmatprep.mubr.bf16.mxu0 %v1526_v20  ;;  %1409 = vmatprep.mubr.bf16.mxu1 %v1527_v21 }
  0x93   : > { %1394 = vmatmul.mubr.bf16.gmra.mrb[12].mxu0 %v1528_v22  ;;  %1410 = vmatmul.mubr.bf16.gmra.mrb[12].mxu1 %v1529_v23 }
 0x14e   : > { %v1383_v25 = vpop.f32.mrb[0].mxu0  ;;  %v1399_v26 = vpop.f32.mrb[0].mxu1 }
 0x14f   : > { %v786_v27 = vadd.f32 %v1383_v25, %v1896_v24  ;;  %v802_v28 = vadd.f32 %v1399_v26, %v1896_v24  ;;  %v551_v29 = vpop.f32.mrb[1].mxu0  ;;  %v615_v30 = vpop.f32.mrb[1].mxu1 }
 0x150   : > { %v784_v31 = vadd.f32 %v1896_v24, %v551_v29  ;;  %v800_v32 = vadd.f32 %v1896_v24, %v615_v30  ;;  %v1384_v33 = vpop.f32.mrb[2].mxu0  ;;  %v1400_v34 = vpop.f32.mrb[2].mxu1 }
 0x151   : > { %v787_v35 = vadd.f32 %v1384_v33, %v1896_v24  ;;  %v803_v36 = vadd.f32 %v1400_v34, %v1896_v24  ;;  %v554_v37 = vpop.f32.mrb[3].mxu0  ;;  %v618_v38 = vpop.f32.mrb[3].mxu1  ;;  %v818_v41 = vmax.f32 %v786_v27, 0.0  ;;  %v834_v42 = vmax.f32 %v802_v28, 0.0 }
 0x152   : > { %v785_v39 = vadd.f32 %v1896_v24, %v554_v37  ;;  %v801_v40 = vadd.f32 %v1896_v24, %v618_v38  ;;  %v816_v45 = vmax.f32 %v784_v31, 0.0  ;;  %v832_v46 = vmax.f32 %v800_v32, 0.0 }
 0x153   : > { %v819_v43 = vmax.f32 %v787_v35, 0.0  ;;  %v835_v44 = vmax.f32 %v803_v36, 0.0 }
 0x154   : > { %v817_v47 = vmax.f32 %v785_v39, 0.0  ;;  %v833_v48 = vmax.f32 %v801_v40, 0.0 }
 0x155   : > { %v1254_v49 = vpack.c.bf16 %v819_v43, %v818_v41  ;;  %v1294_v50 = vpack.c.bf16 %v835_v44, %v834_v42 }
 0x156   : > { %v1249_v51 = vpack.c.bf16 %v817_v47, %v816_v45  ;;  %v1289_v52 = vpack.c.bf16 %v833_v48, %v832_v46  ;;  %v1387_v53 = vpop.f32.mrb[4].mxu0  ;;  %v1403_v54 = vpop.f32.mrb[4].mxu1 }
 0x157   : > { %1326 = vst [vmem:[%s1908_s24 + $0x8] sm:$0xff] %v1254_v49   ;;  %1334 = vst [vmem:[%s1908_s24 + $0x48] sm:$0xff] %v1294_v50   ;;  %v790_v55 = vadd.f32 %v1387_v53, %v1896_v24  ;;  %v806_v56 = vadd.f32 %v1403_v54, %v1896_v24  ;;  %v567_v57 = vpop.f32.mrb[5].mxu0  ;;  %v631_v58 = vpop.f32.mrb[5].mxu1 }
 0x158   : > { %1250 = vst [vmem:[%s1908_s24] sm:$0xff] %v1249_v51   ;;  %1333 = vst [vmem:[%s1908_s24 + $0x40] sm:$0xff] %v1289_v52   ;;  %v788_v59 = vadd.f32 %v1896_v24, %v567_v57  ;;  %v804_v60 = vadd.f32 %v1896_v24, %v631_v58  ;;  %v1388_v61 = vpop.f32.mrb[6].mxu0  ;;  %v1404_v62 = vpop.f32.mrb[6].mxu1 }
 0x159   : > { %v791_v63 = vadd.f32 %v1388_v61, %v1896_v24  ;;  %v807_v0 = vadd.f32 %v1404_v62, %v1896_v24  ;;  %v570_v1 = vpop.f32.mrb[7].mxu0  ;;  %v634_v2 = vpop.f32.mrb[7].mxu1  ;;  %v822_v5 = vmax.f32 %v790_v55, 0.0  ;;  %v838_v6 = vmax.f32 %v806_v56, 0.0 }
 0x15a   : > { %v789_v3 = vadd.f32 %v1896_v24, %v570_v1  ;;  %v805_v4 = vadd.f32 %v1896_v24, %v634_v2  ;;  %v820_v9 = vmax.f32 %v788_v59, 0.0  ;;  %v836_v10 = vmax.f32 %v804_v60, 0.0 }
 0x15b   : > { %v823_v7 = vmax.f32 %v791_v63, 0.0  ;;  %v839_v8 = vmax.f32 %v807_v0, 0.0 }
 0x15c   : > { %v821_v11 = vmax.f32 %v789_v3, 0.0  ;;  %v837_v12 = vmax.f32 %v805_v4, 0.0 }
 0x15d   : > { %v1264_v13 = vpack.c.bf16 %v823_v7, %v822_v5  ;;  %v1304_v14 = vpack.c.bf16 %v839_v8, %v838_v6 }
 0x15e   : > { %v1259_v15 = vpack.c.bf16 %v821_v11, %v820_v9  ;;  %v1299_v16 = vpack.c.bf16 %v837_v12, %v836_v10  ;;  %v1391_v17 = vpop.f32.mrb[8].mxu0  ;;  %v1407_v18 = vpop.f32.mrb[8].mxu1 }
 0x15f   : > { %1328 = vst [vmem:[%s1908_s24 + $0x18] sm:$0xff] %v1264_v13   ;;  %1336 = vst [vmem:[%s1908_s24 + $0x58] sm:$0xff] %v1304_v14   ;;  %v794_v19 = vadd.f32 %v1391_v17, %v1896_v24  ;;  %v810_v20 = vadd.f32 %v1407_v18, %v1896_v24  ;;  %v583_v21 = vpop.f32.mrb[9].mxu0  ;;  %v647_v22 = vpop.f32.mrb[9].mxu1 }
 0x160   : > { %1327 = vst [vmem:[%s1908_s24 + $0x10] sm:$0xff] %v1259_v15   ;;  %1335 = vst [vmem:[%s1908_s24 + $0x50] sm:$0xff] %v1299_v16   ;;  %v792_v23 = vadd.f32 %v1896_v24, %v583_v21  ;;  %v808_v25 = vadd.f32 %v1896_v24, %v647_v22  ;;  %v1392_v26 = vpop.f32.mrb[10].mxu0  ;;  %v1408_v27 = vpop.f32.mrb[10].mxu1 }
 0x161   : > { %v795_v28 = vadd.f32 %v1392_v26, %v1896_v24  ;;  %v811_v29 = vadd.f32 %v1408_v27, %v1896_v24  ;;  %v586_v30 = vpop.f32.mrb[11].mxu0  ;;  %v650_v31 = vpop.f32.mrb[11].mxu1  ;;  %v826_v34 = vmax.f32 %v794_v19, 0.0  ;;  %v842_v35 = vmax.f32 %v810_v20, 0.0 }
 0x162   : > { %v793_v32 = vadd.f32 %v1896_v24, %v586_v30  ;;  %v809_v33 = vadd.f32 %v1896_v24, %v650_v31  ;;  %v824_v38 = vmax.f32 %v792_v23, 0.0  ;;  %v840_v39 = vmax.f32 %v808_v25, 0.0 }
 0x163   : > { %v827_v36 = vmax.f32 %v795_v28, 0.0  ;;  %v843_v37 = vmax.f32 %v811_v29, 0.0 }
 0x164   : > { %v825_v40 = vmax.f32 %v793_v32, 0.0  ;;  %v841_v41 = vmax.f32 %v809_v33, 0.0 }
 0x165   : > { %v1274_v42 = vpack.c.bf16 %v827_v36, %v826_v34  ;;  %v1314_v43 = vpack.c.bf16 %v843_v37, %v842_v35 }
 0x166   : > { %v1269_v44 = vpack.c.bf16 %v825_v40, %v824_v38  ;;  %v1309_v45 = vpack.c.bf16 %v841_v41, %v840_v39  ;;  %v1395_v46 = vpop.f32.mrb[12].mxu0  ;;  %v1411_v47 = vpop.f32.mrb[12].mxu1 }
 0x167   : > { %1330 = vst [vmem:[%s1908_s24 + $0x28] sm:$0xff] %v1274_v42   ;;  %1338 = vst [vmem:[%s1908_s24 + $0x68] sm:$0xff] %v1314_v43   ;;  %v798_v48 = vadd.f32 %v1395_v46, %v1896_v24  ;;  %v814_v49 = vadd.f32 %v1411_v47, %v1896_v24  ;;  %v599_v50 = vpop.f32.mrb[13].mxu0  ;;  %v663_v51 = vpop.f32.mrb[13].mxu1 }
 0x168   : > { %1329 = vst [vmem:[%s1908_s24 + $0x20] sm:$0xff] %v1269_v44   ;;  %1337 = vst [vmem:[%s1908_s24 + $0x60] sm:$0xff] %v1309_v45   ;;  %v796_v52 = vadd.f32 %v1896_v24, %v599_v50  ;;  %v812_v53 = vadd.f32 %v1896_v24, %v663_v51  ;;  %v1396_v54 = vpop.f32.mrb[14].mxu0  ;;  %v1412_v55 = vpop.f32.mrb[14].mxu1 }
 0x169   : > { %v799_v56 = vadd.f32 %v1396_v54, %v1896_v24  ;;  %v815_v57 = vadd.f32 %v1412_v55, %v1896_v24  ;;  %v602_v58 = vpop.f32.mrb[15].mxu0  ;;  %v666_v59 = vpop.f32.mrb[15].mxu1  ;;  %v830_v62 = vmax.f32 %v798_v48, 0.0  ;;  %v846_v63 = vmax.f32 %v814_v49, 0.0 }
 0x16a   : > { %v797_v60 = vadd.f32 %v1896_v24, %v602_v58  ;;  %v813_v61 = vadd.f32 %v1896_v24, %v666_v59  ;;  %v828_v2 = vmax.f32 %v796_v52, 0.0  ;;  %v844_v3 = vmax.f32 %v812_v53, 0.0 }
 0x16b   : > { %v831_v0 = vmax.f32 %v799_v56, 0.0  ;;  %v847_v1 = vmax.f32 %v815_v57, 0.0 }
 0x16c   : > { %v829_v4 = vmax.f32 %v797_v60, 0.0  ;;  %v845_v5 = vmax.f32 %v813_v61, 0.0 }
 0x16d   : > { %v1284_v6 = vpack.c.bf16 %v831_v0, %v830_v62  ;;  %v1324_v7 = vpack.c.bf16 %v847_v1, %v846_v63 }
 0x16e   : > { %v1279_v24 = vpack.c.bf16 %v829_v4, %v828_v2  ;;  %v1319_v8 = vpack.c.bf16 %v845_v5, %v844_v3 }
 0x16f   : > { %1332 = vst [vmem:[%s1908_s24 + $0x38] sm:$0xff] %v1284_v6   ;;  %1340 = vst [vmem:[%s1908_s24 + $0x78] sm:$0xff] %v1324_v7  }
 0x170   : > { %1331 = vst [vmem:[%s1908_s24 + $0x30] sm:$0xff] %v1279_v24   ;;  %1339 = vst [vmem:[%s1908_s24 + $0x70] sm:$0xff] %v1319_v8  }
 0x171   : > { %1601 = shalt.err (!%p1598_p5)
}
 0x172   : > { %s1602_s6 = scalar_lea.hbm %s1951_s15, 2048  ;;  %s1606_s19 = scalar_lea.hbm %s2009_s3, 4096 }
 0x173   : > { %p1603_p9 = scmp.ne.s32.totalorder %s1951_s15, %s1602_s6  ;;  %p1607_p3 = scmp.lt.u32.totalorder %s1951_s15, %s2009_s3 }
 0x174   : > { %p1608_p7 = scmp.lt.u32.totalorder %s1606_s19, %s1602_s6  ;;  %p1610_p4 = scmp.lt.u32.totalorder %s1602_s6, %s1951_s15 }
 0x175   : > { %p1604_p1 = pnand %p1603_p9, %p1802_p10 }
 0x176   : > { %p1609_p13 = por %p1608_p7, %p1607_p3 }
 0x177   : > { %p1605_p2 = pneg %p1604_p1 }
 0x178   : > { %p1611_p6 = por %p1610_p4, %p1609_p13 }
 0x17a   : > { %p1612_p8 = pnand %p1611_p6, %p1605_p2 }
 0x17c   : > { %1615 = shalt.err (!%p1612_p8)
}
 0x17d   : > { %s1681_s24 = smov 64   ;;  %s1682_s10 = smov 4  }
 0x17e   : > { %1435 = dma.vmem_to_hbm [thread:$0]  (%p1802_p10), %s1953_s11, 2048, %s1951_s15, %s1009_s25, %s1681_s24, %s1681_s24, %s1682_s10  }
 0x17f PF: > { %s1038_s9 = sand.u32 1, %s1654_s12   ;;  %p2027_p12 = scmp.ne.s32.totalorder %s2017_s23, 0 }
 0x180   : > { %p2028_p11 = scmp.ge.s32.totalorder %s1674_s17, 2  ;;  %s1039_s18 = scalar_lea.sflag [#allocation5], %s1038_s9 }
 0x182   : > { %p1446_p0 = pnand %p2028_p11, %p2027_p12 }
 0x184   : > { %1649 = dma.done.wait (!%p1446_p0), %s1039_s18, 2048  }
 0x185   : > { %1651 = vsyncadd (!%p1446_p0), %s1039_s18, 4294965248  ;;  %s20_s17 = sadd.s32 1, %s1674_s17   ;;  %s2029_s12 = smov %s1658_s13 }
 0x186   : > { %p17_p5 = scmp.ge.s32.totalorder %s20_s17, 4   ;;  %s2030_s13 = smov %s1662_s14 }
 0x187   : > { %s2031_s14 = smov %s1811_s5  ;;  %s2032_s15 = smov %s1670_s16 }
 0x188   : > { %s2033_s16 = smov %s2035_s28  ;;  %19 = sbr.rel (!%p17_p5) target bundleno = 7 (0x7), region = 93 }
 0x18f   :  { %1044 = vsyncpa [#allocation4], 1 }
 0x190   :  { %1046 = vsyncpa [#allocation4 + $0x1], 1 }
 0x191   :  { %1047 = vsyncpa [#allocation7], 1 }
 0x192   :  { %1048 = vsyncpa [#allocation5], 1 }
 0x193   :  { %1050 = vsyncpa [#allocation5 + $0x1], 1 }

</bundles_post_ra>
